<compile_context>
chip_gen: v7x
topology: tpu7x:2x2x1
jax: 0.10.0
libtpu: 0.0.40
codegen_flags: <defaults>
</compile_context>

<pallas_src>
import jax
import jax.numpy as jnp
from jax.experimental import pallas as pl
from jax.experimental.pallas import tpu as pltpu


def _round_up(n: int, m: int) -> int:
    return ((n + m - 1) // m) * m


def mlp3_kernel(x_ref, w1_ref, b1_ref, w2_ref, b2_ref, w3_ref, b3_ref, o_ref):
    # Feature-major blocks: batch on the lane axis, features on sublanes.
    x = x_ref[...]                                                    # [2, TB]
    h1 = jnp.dot(w1_ref[...], x,
                 preferred_element_type=jnp.float32) + b1_ref[...]    # [16, TB]
    h2 = jnp.dot(w2_ref[...], h1,
                 preferred_element_type=jnp.float32) + b2_ref[...]    # [16, TB]
    h3 = jnp.dot(w3_ref[...], h2,
                 preferred_element_type=jnp.float32) + b3_ref[...]    # [1, TB]
    o_ref[...] = h3.astype(o_ref.dtype)                               # lane-dense store


def circle_model_v2(x, params, *, tb=None):
    """x: [B, 2] float32. params: PyTorch-layout dict (w*: [out, in], b*: [out])."""
    B = x.shape[0]
    if tb is None:
        # Big tiles amortize the ~0.35us/step overhead; cap so VMEM stays tiny.
        tb = min(2048, _round_up(B, 128))
    pB = _round_up(B, tb)
    n_blocks = pB // tb

    # Feature-major, zero-padded along the batch/lane axis.
    x_t = jnp.pad(x.T, ((0, 0), (0, pB - B)))                         # [2, pB]

    w1, w2, w3 = params["w1"], params["w2"], params["w3"]             # [out, in]
    b1 = params["b1"].reshape(-1, 1)                                  # [16, 1]
    b2 = params["b2"].reshape(-1, 1)                                  # [16, 1]
    b3 = params["b3"].reshape(-1, 1)                                  # [1, 1]

    const = lambda i: (0, 0)   # weights/biases resident across the whole grid

    weight_bytes = 4 * (16 * 2 + 16 + 16 * 16 + 16 + 16 + 1)
    out = pl.pallas_call(
        mlp3_kernel,
        out_shape=jax.ShapeDtypeStruct((1, pB), jnp.float32),
        grid_spec=pltpu.PrefetchScalarGridSpec(
            num_scalar_prefetch=0,
            grid=(n_blocks,),
            in_specs=[
                pl.BlockSpec((2, tb), lambda i: (0, i)),   # x tile (batch on lanes)
                pl.BlockSpec((16, 2), const),              # w1
                pl.BlockSpec((16, 1), const),              # b1
                pl.BlockSpec((16, 16), const),             # w2
                pl.BlockSpec((16, 1), const),              # b2
                pl.BlockSpec((1, 16), const),              # w3
                pl.BlockSpec((1, 1), const),               # b3
            ],
            out_specs=pl.BlockSpec((1, tb), lambda i: (0, i)),
        ),
        compiler_params=pltpu.CompilerParams(
            dimension_semantics=("parallel",),             # megacore on v7x
        ),
        cost_estimate=pl.CostEstimate(
            flops=608 * pB,                                # 2*(2*16 + 16*16 + 16*1) per row
            transcendentals=0,
            bytes_accessed=12 * pB + weight_bytes,         # x read + y write + weights
        ),
    )(x_t, w1, b1, w2, b2, w3, b3)

    # Back to PyTorch output convention [B, 1]; drop batch padding.
    return out[0, :B].reshape(B, 1)


def init_params(key):
    """Deterministic init mimicking PyTorch nn.Linear default (U[-1/sqrt(fan_in), +])."""
    def linear(k, fan_in, fan_out):
        kw, kb = jax.random.split(k)
        bound = 1.0 / jnp.sqrt(float(fan_in))
        w = jax.random.uniform(kw, (fan_out, fan_in), jnp.float32, -bound, bound)
        b = jax.random.uniform(kb, (fan_out,), jnp.float32, -bound, bound)
        return w, b

    k1, k2, k3 = jax.random.split(key, 3)
    w1, b1 = linear(k1, 2, 16)
    w2, b2 = linear(k2, 16, 16)
    w3, b3 = linear(k3, 16, 1)
    return {"w1": w1, "b1": b1, "w2": w2, "b2": b2, "w3": w3, "b3": b3}


def reference(x, params):
    h = x @ params["w1"].T + params["b1"]
    h = h @ params["w2"].T + params["b2"]
    return h @ params["w3"].T + params["b3"]


if __name__ == "__main__":
    key = jax.random.PRNGKey(0)
    kx1, kx2, kp = jax.random.split(key, 3)
    params = init_params(kp)

    # Small batch (single grid step, padded to one 128-wide lane tile).
    B1 = 8
    x1 = jax.random.normal(kx1, (B1, 2), dtype=jnp.float32)
    out1 = circle_model_v2(x1, params)
    jax.block_until_ready(out1)
    assert out1.shape == (B1, 1)
    assert jnp.allclose(out1, reference(x1, params), atol=1e-5, rtol=1e-5)

    # Non-multiple batch with a forced small tile -> exercises grid > 1,
    # resident weights across steps, and batch padding.
    B2 = 300
    x2 = jax.random.normal(kx2, (B2, 2), dtype=jnp.float32)
    out2 = circle_model_v2(x2, params, tb=128)
    jax.block_until_ready(out2)
    assert out2.shape == (B2, 1)
    assert jnp.allclose(out2, reference(x2, params), atol=1e-5, rtol=1e-5)

    print("KERNEL_OK")
</pallas_src>

<mosaic_0001>
module attributes {stable_mosaic.version = 11 : i64} {
  func.func @mlp3_kernel(%arg0: i32, %arg1: memref<2x128xf32, #tpu.memory_space<vmem>>, %arg2: memref<16x2xf32, #tpu.memory_space<vmem>>, %arg3: memref<16x1xf32, #tpu.memory_space<vmem>>, %arg4: memref<16x16xf32, #tpu.memory_space<vmem>>, %arg5: memref<16x1xf32, #tpu.memory_space<vmem>>, %arg6: memref<1x16xf32, #tpu.memory_space<vmem>>, %arg7: memref<1x1xf32, #tpu.memory_space<vmem>>, %arg8: memref<1x128xf32, #tpu.memory_space<vmem>>) attributes {dimension_semantics = [#tpu.dimension_semantics<parallel>], iteration_bounds = array<i64: 1>, scalar_prefetch = 0 : i64, scratch_operands = 0 : i64, tpu.core_type = #tpu.core_type<tc>, window_params = [{transform_indices = @transform_0, window_bounds = array<i64: 2, 128>}, {pipeline_mode = #tpu.pipeline_mode<synchronous>, transform_indices = @transform_1, window_bounds = array<i64: 16, 2>}, {pipeline_mode = #tpu.pipeline_mode<synchronous>, transform_indices = @transform_2, window_bounds = array<i64: 16, 1>}, {pipeline_mode = #tpu.pipeline_mode<synchronous>, transform_indices = @transform_3, window_bounds = array<i64: 16, 16>}, {pipeline_mode = #tpu.pipeline_mode<synchronous>, transform_indices = @transform_4, window_bounds = array<i64: 16, 1>}, {pipeline_mode = #tpu.pipeline_mode<synchronous>, transform_indices = @transform_5, window_bounds = array<i64: 1, 16>}, {pipeline_mode = #tpu.pipeline_mode<synchronous>, transform_indices = @transform_6, window_bounds = array<i64: 1, 1>}, {transform_indices = @transform_7, window_bounds = array<i64: 1, 128>}]} {
    %c0 = arith.constant 0 : index
    %c0_0 = arith.constant 0 : index
    %0 = vector.load %arg1[%c0, %c0_0] : memref<2x128xf32, #tpu.memory_space<vmem>>, vector<2x128xf32>
    %c0_1 = arith.constant 0 : index
    %c0_2 = arith.constant 0 : index
    %1 = vector.load %arg2[%c0_1, %c0_2] : memref<16x2xf32, #tpu.memory_space<vmem>>, vector<16x2xf32>
    %cst = arith.constant dense<0.000000e+00> : vector<16x128xf32>
    %2 = tpu.matmul %1, %0, %cst {dimension_numbers = #tpu.dot_dimension_numbers<[1], [0], [0], [1], [0, 0, 1, 1], [], []>} : vector<16x2xf32>, vector<2x128xf32>, vector<16x128xf32> -> vector<16x128xf32>
    %c0_3 = arith.constant 0 : index
    %c0_4 = arith.constant 0 : index
    %3 = vector.load %arg3[%c0_3, %c0_4] : memref<16x1xf32, #tpu.memory_space<vmem>>, vector<16x1xf32>
    %4 = vector.broadcast %3 : vector<16x1xf32> to vector<16x128xf32>
    %5 = arith.addf %2, %4 : vector<16x128xf32>
    %c0_5 = arith.constant 0 : index
    %c0_6 = arith.constant 0 : index
    %6 = vector.load %arg4[%c0_5, %c0_6] : memref<16x16xf32, #tpu.memory_space<vmem>>, vector<16x16xf32>
    %cst_7 = arith.constant dense<0.000000e+00> : vector<16x128xf32>
    %7 = tpu.matmul %6, %5, %cst_7 {dimension_numbers = #tpu.dot_dimension_numbers<[1], [0], [0], [1], [0, 0, 1, 1], [], []>} : vector<16x16xf32>, vector<16x128xf32>, vector<16x128xf32> -> vector<16x128xf32>
    %c0_8 = arith.constant 0 : index
    %c0_9 = arith.constant 0 : index
    %8 = vector.load %arg5[%c0_8, %c0_9] : memref<16x1xf32, #tpu.memory_space<vmem>>, vector<16x1xf32>
    %9 = vector.broadcast %8 : vector<16x1xf32> to vector<16x128xf32>
    %10 = arith.addf %7, %9 : vector<16x128xf32>
    %c0_10 = arith.constant 0 : index
    %c0_11 = arith.constant 0 : index
    %11 = vector.load %arg6[%c0_10, %c0_11] : memref<1x16xf32, #tpu.memory_space<vmem>>, vector<1x16xf32>
    %cst_12 = arith.constant dense<0.000000e+00> : vector<1x128xf32>
    %12 = tpu.matmul %11, %10, %cst_12 {dimension_numbers = #tpu.dot_dimension_numbers<[1], [0], [0], [1], [0, 0, 1, 1], [], []>} : vector<1x16xf32>, vector<16x128xf32>, vector<1x128xf32> -> vector<1x128xf32>
    %c0_13 = arith.constant 0 : index
    %c0_14 = arith.constant 0 : index
    %13 = vector.load %arg7[%c0_13, %c0_14] : memref<1x1xf32, #tpu.memory_space<vmem>>, vector<1x1xf32>
    %14 = vector.broadcast %13 : vector<1x1xf32> to vector<1x128xf32>
    %15 = arith.addf %12, %14 : vector<1x128xf32>
    %c0_15 = arith.constant 0 : index
    %c0_16 = arith.constant 0 : index
    %16 = vector.load %arg8[%c0_15, %c0_16] : memref<1x128xf32, #tpu.memory_space<vmem>>, vector<1x128xf32>
    tpu.vector_store %arg8[%c0_15, %c0_16], %15 {strides = array<i32>} : memref<1x128xf32, #tpu.memory_space<vmem>>, vector<1x128xf32>,
    return
  }
  func.func @transform_0(%arg0: i32) -> (i32, i32) {
    %c0_i32 = arith.constant 0 : i32
    %c0_i32_0 = arith.constant 0 : i32
    return %c0_i32, %arg0 : i32, i32
  }
  func.func @transform_1(%arg0: i32) -> (i32, i32) {
    %c0_i32 = arith.constant 0 : i32
    %c0_i32_0 = arith.constant 0 : i32
    %c0_i32_1 = arith.constant 0 : i32
    return %c0_i32, %c0_i32_0 : i32, i32
  }
  func.func @transform_2(%arg0: i32) -> (i32, i32) {
    %c0_i32 = arith.constant 0 : i32
    %c0_i32_0 = arith.constant 0 : i32
    %c0_i32_1 = arith.constant 0 : i32
    return %c0_i32, %c0_i32_0 : i32, i32
  }
  func.func @transform_3(%arg0: i32) -> (i32, i32) {
    %c0_i32 = arith.constant 0 : i32
    %c0_i32_0 = arith.constant 0 : i32
    %c0_i32_1 = arith.constant 0 : i32
    return %c0_i32, %c0_i32_0 : i32, i32
  }
  func.func @transform_4(%arg0: i32) -> (i32, i32) {
    %c0_i32 = arith.constant 0 : i32
    %c0_i32_0 = arith.constant 0 : i32
    %c0_i32_1 = arith.constant 0 : i32
    return %c0_i32, %c0_i32_0 : i32, i32
  }
  func.func @transform_5(%arg0: i32) -> (i32, i32) {
    %c0_i32 = arith.constant 0 : i32
    %c0_i32_0 = arith.constant 0 : i32
    %c0_i32_1 = arith.constant 0 : i32
    return %c0_i32, %c0_i32_0 : i32, i32
  }
  func.func @transform_6(%arg0: i32) -> (i32, i32) {
    %c0_i32 = arith.constant 0 : i32
    %c0_i32_0 = arith.constant 0 : i32
    %c0_i32_1 = arith.constant 0 : i32
    return %c0_i32, %c0_i32_0 : i32, i32
  }
  func.func @transform_7(%arg0: i32) -> (i32, i32) {
    %c0_i32 = arith.constant 0 : i32
    %c0_i32_0 = arith.constant 0 : i32
    return %c0_i32, %arg0 : i32, i32
  }
}

</mosaic_0001>

<bundles_post_ra>
// kernel: tpu_custom_call.1
= control target key start
LH: loop header
LB: loop body
LE: loop exit
PB: predicated region body
PF: predicated region fallthrough
CT: control target
= control target key end

     0   :  { %s491_s0 = inlined_call_operand.vmem [shape: f32[2,128], index: 0, kind: input, shape index: {}]   ;;  %s492_s1 = inlined_call_operand.vmem [shape: f32[16,2], index: 1, kind: input, shape index: {}]   ;;  %s493_s2 = inlined_call_operand.vmem [shape: f32[16,1], index: 2, kind: input, shape index: {}]   ;;  %s494_s3 = inlined_call_operand.vmem [shape: f32[16,16], index: 3, kind: input, shape index: {}]   ;;  %s495_s4 = inlined_call_operand.vmem [shape: f32[16,1], index: 4, kind: input, shape index: {}]   ;;  %s496_s5 = inlined_call_operand.vmem [shape: f32[1,16], index: 5, kind: input, shape index: {}]   ;;  %s497_s6 = inlined_call_operand.<no memory space> [shape: f32[1,1], index: 6, kind: input, shape index: {}]   ;;  %s498_s7 = inlined_call_operand.hbm [shape: f32[1,128], index: 7, kind: output, shape index: {}]  }
   0x1   :  { %v12_v0 = vstv %s497_s6 }
   0x2   :  { %13 = vst [vmem:[#allocation2] sm:$0x1] %v12_v0 }
   0x3   :  { %v29_v1 = vld [vmem:[%s491_s0] sm:$0x3]  ;;  %vm51_vm0 = vcmask 1041408   ;;  %vm44_vm1 = vcmask 15360   ;;  %v31_v3 = vld [vmem:[%s492_s1 + $0x8] sm:$0xff]  ;;  %v398_v5 = vmov 0  }
   0x4   :  { %v30_v2 = vld [vmem:[%s492_s1] sm:$0xff]  ;;  %341 = vmatprep.subr.msk.mxu0 %vm51_vm0, %v29_v1  ;;  %372 = vset.pattern.permute.xlu0 %v398_v5 }
   0x5   :  { %343 = vmatprep.mubr.msk.f32.mxu0 %vm44_vm1, %v30_v2  ;;  %v32_v4 = vld [vmem:[%s493_s2] sm:$0xff]  ;;  %342 = vmatpush3.msk.msra.mxu0 %vm51_vm0, %v29_v1 }
   0x6   :  { %14 = vsyncpa [#allocation4], 0  ;;  %344 = vmatmul.mubr.msk.f32.vlgmr.msra.gmra.mrb[0].mxu0 %vm44_vm1, %v31_v3  ;;  %36 = vperm.xlu0 %372, %v32_v4   ;;  %v33_v6 = vld [vmem:[%s493_s2 + $0x8] sm:$0xff]  ;;  %v130_v8 = vld [vmem:[%s494_s3] sm:$0xff]  ;;  %vm144_vm2 = vcmask 130048   ;;  %v399_v19 = vmov 0.0|0.0   ;;  %v233_v29 = vlaneseq }
   0x7   :  { %373 = vset.pattern.permute.xlu1 %v398_v5  ;;  %350 = vmatprep.mubr.msk.f32.mxu1 %vm144_vm2, %v130_v8  ;;  %v132_v9 = vld [vmem:[%s495_s4] sm:$0xff]  ;;  %v133_v10 = vld [vmem:[%s495_s4 + $0x8] sm:$0xff]  ;;  %vm400_vm3 = vmmov 0   ;;  %v401_v20 = vmov 0.0  }
   0x8   :  { %136 = vperm.xlu1 %373, %v132_v9   ;;  %v131_v18 = vld [vmem:[%s494_s3 + $0x8] sm:$0xff]  ;;  %364 = vmatprep.subr.bf16.mxu0 %v399_v19  ;;  %v226_v28 = vld [vmem:[%s496_s5] sm:$0x1]  ;;  %v234_v30 = vshrl.u32 %v233_v29, 7  ;;  %s402_s3 = smov [#allocation3]  }
   0x9   :  { %v227_v7 = vld [vmem:[#allocation2] sm:$0x1]  ;;  %357 = vmatprep.mubr.msk.f32.mxu0 %vm400_vm3, %v401_v20  ;;  %s317_s18 = sshll.u32 %s402_s3, 4  ;;  %s318_s18 = int_to_ptr.vmem [resolvable:$true] %s317_s18 }
   0xa   :  { %41 = vperm.xlu0 %372, %v33_v6   ;;  %v235_v31 = vsub.s32 0, %v234_v30  ;;  %s374_s19 = scalar_lea.vmem %s318_s18, 16  ;;  %s378_s20 = scalar_lea.vmem %s318_s18, 32 }
   0xb   :  { %p375_p0 = scmp.ne.s32.totalorder %s318_s18, %s374_s19  ;;  %p379_p1 = scmp.lt.s32.totalorder %s318_s18, %s318_s18 }
   0xc   :  { %141 = vperm.xlu1 %373, %v133_v10   ;;  %p380_p2 = scmp.lt.s32.totalorder %s378_s20, %s374_s19 }
   0xe   :  { %230 = vperm.xlu0 %372, %v227_v7   ;;  %p381_p3 = por %p380_p2, %p379_p1 }
  0x10   :  { %p382_p4 = pnand %p381_p3, %p375_p0 }
  0x85   :  { %v37_v11 = vpop.permute.xlu0 %36 }
  0x87   :  { %v137_v21 = vpop.permute.xlu1 %136 }
  0x89   :  { %v42_v12 = vpop.permute.xlu0 %41 }
  0x8b   :  { %v142_v22 = vpop.permute.xlu1 %141 }
  0x8d   :  { %v231_v32 = vpop.permute.xlu0 %230 }
  0x8e   :  { %v236_v33 = vrot.slane %v231_v32, %v235_v31 }
  0xd9   :  { %v345_v13 = vpop.f32.mrb[0].mxu0 }
  0xda   :  { %v127_v14 = vadd.f32 %v345_v13, %v42_v12  ;;  %v121_v15 = vpop.f32.mrb[1].mxu0 }
  0xdb   :  { %v122_v16 = vadd.f32 %v121_v15, %v37_v11 }
  0xdd   :  { %v360_v17 = vpack.c.bf16 %v127_v14, %v122_v16 }
  0xdf   :  { %361 = vmatprep.subr.bf16.mxu1 %v360_v17 }
  0xe0   :  { %363 = vmatpush3.bf16.msra.mxu1 %v360_v17 }
  0xe3   :  { %351 = vmatmul.mubr.msk.f32.vlgmr.msra.gmra.mrb[0].mxu1 %vm144_vm2, %v131_v18 }
 0x1b6   :  { %v352_v23 = vpop.f32.mrb[0].mxu1 }
 0x1b7   :  { %v223_v24 = vadd.f32 %v352_v23, %v142_v22  ;;  %v217_v25 = vpop.f32.mrb[1].mxu1 }
 0x1b8   :  { %v218_v26 = vadd.f32 %v217_v25, %v137_v21 }
 0x1ba   :  { %v365_v27 = vpack.c.bf16 %v223_v24, %v218_v26 }
 0x1bc   :  { %366 = vmatpush3.bf16.msra.mxu0 %v365_v27 }
 0x1bf   :  { %358 = vmatmul.mubr.msk.f32.vlgmr.msra.gmra.mrb[2].mxu0 %vm144_vm2, %v226_v28 }
 0x292   :  { %v306_v34 = vpop.f32.mrb[2].mxu0 }
 0x293   :  { %v307_v35 = vadd.f32 %v306_v34, %v236_v33  ;;  %v359_v36 = vpop.f32.mrb[3].mxu0 }
 0x295   :  { %310 = vst [vmem:[#allocation3] sm:$0x1] %v307_v35 }
 0x296   :  { %385 = shalt.err (!%p382_p4)
}
 0x297   :  { %s386_s22 = scalar_lea.hbm %s498_s7, 16 }
 0x298   :  { %p387_p5 = scmp.ne.s32.totalorder %s498_s7, %s386_s22  ;;  %p390_p6 = scmp.lt.u32.totalorder %s386_s22, %s498_s7 }
 0x29a   :  { %p392_p7 = pnand %p390_p6, %p387_p5 }
 0x29c   :  { %395 = shalt.err (!%p392_p7)
}
 0x29d   :  { %320 = dma.vmem_to_hbm [thread:$0]  %s318_s18, 16, %s498_s7, [#allocation4]  }
 0x29e   :  { %396 = dma.done.wait [#allocation4], 16  }
 0x29f   :  { %397 = vsyncadd [#allocation4], 4294967280 }
 0x2a0   :  { %324 = vsyncpa [#allocation4], 1 }

</bundles_post_ra>
